<compile_context>
chip_gen: v7x
topology: tpu7x:2x2x1
jax: 0.10.0
libtpu: 0.0.40
codegen_flags: <defaults>
</compile_context>

<pallas_src>
import jax
import jax.numpy as jnp
from jax import lax
from jax.experimental import pallas as pl
from jax.experimental.pallas import tpu as pltpu  # noqa: F401  (kept for TPU-specific tuning hooks)

IN_CHANNELS = 1
PATCH_SIZE = 4
EMBED_DIM = PATCH_SIZE ** 2 * IN_CHANNELS    # 16
IMG_SIZE = 28
NUM_PATCHES = (IMG_SIZE // PATCH_SIZE) ** 2  # 49


def patch_embed_kernel(patches_ref, w_ref, pos_ref, out_ref):
    # patches_ref: (B*P, K)   all patches of the whole batch
    # w_ref:       (K, E)     flattened conv weight
    # pos_ref:     (P+1, E)   row 0 = pos[0] + cls_token ; rows 1.. = pos[1:] + conv_bias
    # out_ref:     (B, P+1, E)
    B, p1, _ = out_ref.shape
    P = p1 - 1

    # Single MXU matmul for the entire batch (f32 accumulation).
    emb = jnp.dot(patches_ref[...], w_ref[...],
                  preferred_element_type=jnp.float32)          # (B*P, E)

    cls_row = pos_ref[0:1, :].astype(out_ref.dtype)            # (1, E)  cls + pos[0]
    pos_patches = pos_ref[1:, :]                               # (P, E)  pos[1:] + bias

    # Direct slice stores per batch element (B is a small static constant);
    # no in-kernel concatenate, no intermediate VMEM copy.
    for b in range(B):
        out_ref[b, 0:1, :] = cls_row
        out_ref[b, 1:, :] = (emb[b * P:(b + 1) * P, :]
                             + pos_patches).astype(out_ref.dtype)
    # TODO(synk): Dropout(p=0.001) is treated as identity (eval semantics); no RNG mask.


def patch_embedding(x, conv_w, conv_b, cls_token, pos_emb):
    # x is NCHW (B, C, H, W), matching the PyTorch Conv2d input layout.
    B, C, H, W = x.shape
    ps = PATCH_SIZE
    Hp, Wp = H // ps, W // ps
    P = Hp * Wp
    K = C * ps * ps
    E = conv_w.shape[0]
    # The PyTorch module only type-checks for in_channels == 1 (cls_token carries
    # C rows but position_embeddings expects exactly one cls row).
    assert C == IN_CHANNELS == 1, "PatchEmbedding cls_token semantics require C == 1"

    # Glue (plain XLA): non-overlapping patch extraction is exactly the strided
    # conv; (c, ph, pw) ordering matches PyTorch conv-weight flattening.
    patches = x.reshape(B, C, Hp, ps, Wp, ps)
    patches = patches.transpose(0, 2, 4, 1, 3, 5).reshape(B * P, K)
    w_flat = conv_w.reshape(E, K).T                       # (K, E)

    # Fold the conv bias and the cls token into the position embeddings once.
    # These are parameters (constant across calls), so this is done once by
    # XLA and removes two DMA'd operands + two VPU adds from the kernel.
    pos = pos_emb.reshape(P + 1, E)
    cls_row = cls_token.reshape(1, E)                     # valid because C == 1
    pos_adj = jnp.concatenate(
        [pos[0:1, :] + cls_row, pos[1:, :] + conv_b.reshape(1, E)], axis=0)

    # Whole batch in one kernel step: at a few KB per image, a grid over B is
    # pure launch/pipeline overhead. (For very large B, tile the batch in
    # blocks of hundreds of images per step rather than one image per step.)
    out = pl.pallas_call(
        patch_embed_kernel,
        out_shape=jax.ShapeDtypeStruct((B, P + 1, E), x.dtype),
        grid=(1,),
        in_specs=[
            pl.BlockSpec((B * P, K), lambda i: (0, 0)),
            pl.BlockSpec((K, E), lambda i: (0, 0)),
            pl.BlockSpec((P + 1, E), lambda i: (0, 0)),
        ],
        out_specs=pl.BlockSpec((B, P + 1, E), lambda i: (0, 0, 0)),
    )(patches, w_flat, pos_adj)
    return out


def patch_embedding_ref(x, conv_w, conv_b, cls_token, pos_emb):
    # Pure-JAX reference using a real strided conv (NCHW, OIHW).
    B = x.shape[0]
    y = lax.conv_general_dilated(
        x, conv_w,
        window_strides=(PATCH_SIZE, PATCH_SIZE),
        padding='VALID',
        dimension_numbers=('NCHW', 'OIHW', 'NCHW'))          # (B, E, Hp, Wp)
    y = y + conv_b.reshape(1, -1, 1, 1)
    y = y.reshape(B, EMBED_DIM, -1).transpose(0, 2, 1)        # (B, P, E)
    cls = jnp.broadcast_to(cls_token.reshape(1, 1, EMBED_DIM),
                           (B, 1, EMBED_DIM))
    y = jnp.concatenate([cls, y], axis=1)                     # (B, P+1, E)
    return y + pos_emb.reshape(1, NUM_PATCHES + 1, EMBED_DIM)


if __name__ == "__main__":
    key = jax.random.PRNGKey(0)
    k_x, k_w, k_b, k_cls, k_pos = jax.random.split(key, 5)

    B = 2
    x = jax.random.normal(k_x, (B, IN_CHANNELS, IMG_SIZE, IMG_SIZE), jnp.float32)

    # Deterministic synthetic parameters (shapes from PatchEmbedding.__init__).
    conv_w = jax.random.normal(
        k_w, (EMBED_DIM, IN_CHANNELS, PATCH_SIZE, PATCH_SIZE), jnp.float32) * 0.1
    conv_b = jax.random.normal(k_b, (EMBED_DIM,), jnp.float32) * 0.1
    cls_token = jax.random.normal(k_cls, (1, IN_CHANNELS, EMBED_DIM), jnp.float32)
    pos_emb = jax.random.normal(
        k_pos, (1, NUM_PATCHES + 1, EMBED_DIM), jnp.float32)

    out = jax.block_until_ready(
        patch_embedding(x, conv_w, conv_b, cls_token, pos_emb))

    ref = patch_embedding_ref(x, conv_w, conv_b, cls_token, pos_emb)
    assert out.shape == (B, NUM_PATCHES + 1, EMBED_DIM), out.shape
    assert jnp.allclose(out, ref, atol=1e-4, rtol=1e-4), "mismatch vs reference"

    print("KERNEL_OK")
</pallas_src>

<mosaic_0001>
module attributes {stable_mosaic.version = 11 : i64} {
  func.func @patch_embed_kernel(%arg0: i32, %arg1: memref<98x16xf32, #tpu.memory_space<vmem>>, %arg2: memref<16x16xf32, #tpu.memory_space<vmem>>, %arg3: memref<50x16xf32, #tpu.memory_space<vmem>>, %arg4: memref<2x50x16xf32, #tpu.memory_space<vmem>>) attributes {dimension_semantics = [#tpu.dimension_semantics<arbitrary>], iteration_bounds = array<i64: 1>, scalar_prefetch = 0 : i64, scratch_operands = 0 : i64, tpu.core_type = #tpu.core_type<tc>, window_params = [{pipeline_mode = #tpu.pipeline_mode<synchronous>, transform_indices = @transform_0, window_bounds = array<i64: 98, 16>}, {pipeline_mode = #tpu.pipeline_mode<synchronous>, transform_indices = @transform_1, window_bounds = array<i64: 16, 16>}, {pipeline_mode = #tpu.pipeline_mode<synchronous>, transform_indices = @transform_2, window_bounds = array<i64: 50, 16>}, {pipeline_mode = #tpu.pipeline_mode<synchronous>, transform_indices = @transform_3, window_bounds = array<i64: 2, 50, 16>}]} {
    %c0 = arith.constant 0 : index
    %c0_0 = arith.constant 0 : index
    %0 = vector.load %arg1[%c0, %c0_0] : memref<98x16xf32, #tpu.memory_space<vmem>>, vector<98x16xf32>
    %c0_1 = arith.constant 0 : index
    %c0_2 = arith.constant 0 : index
    %1 = vector.load %arg2[%c0_1, %c0_2] : memref<16x16xf32, #tpu.memory_space<vmem>>, vector<16x16xf32>
    %cst = arith.constant dense<0.000000e+00> : vector<98x16xf32>
    %2 = tpu.matmul %0, %1, %cst {dimension_numbers = #tpu.dot_dimension_numbers<[1], [0], [0], [1], [0, 0, 1, 1], [], []>} : vector<98x16xf32>, vector<16x16xf32>, vector<98x16xf32> -> vector<98x16xf32>
    %c0_3 = arith.constant 0 : index
    %c0_4 = arith.constant 0 : index
    %3 = vector.load %arg3[%c0_3, %c0_4] : memref<50x16xf32, #tpu.memory_space<vmem>>, vector<1x16xf32>
    %c1 = arith.constant 1 : index
    %c0_5 = arith.constant 0 : index
    %4 = vector.load %arg3[%c1, %c0_5] : memref<50x16xf32, #tpu.memory_space<vmem>>, vector<49x16xf32>
    %c0_6 = arith.constant 0 : index
    %c0_7 = arith.constant 0 : index
    %c0_8 = arith.constant 0 : index
    %5 = vector.load %arg4[%c0_6, %c0_7, %c0_8] : memref<2x50x16xf32, #tpu.memory_space<vmem>>, vector<1x1x16xf32>
    %6 = vector.shape_cast %5 : vector<1x1x16xf32> to vector<1x16xf32>
    %7 = vector.shape_cast %3 : vector<1x16xf32> to vector<1x1x16xf32>
    tpu.vector_store %arg4[%c0_6, %c0_7, %c0_8], %7 {strides = array<i32>} : memref<2x50x16xf32, #tpu.memory_space<vmem>>, vector<1x1x16xf32>,
    %8 = vector.extract_strided_slice %2 {offsets = [0, 0], sizes = [49, 16], strides = [1, 1]} : vector<98x16xf32> to vector<49x16xf32>
    %9 = arith.addf %8, %4 : vector<49x16xf32>
    %c0_9 = arith.constant 0 : index
    %c1_10 = arith.constant 1 : index
    %c0_11 = arith.constant 0 : index
    %10 = vector.load %arg4[%c0_9, %c1_10, %c0_11] : memref<2x50x16xf32, #tpu.memory_space<vmem>>, vector<1x49x16xf32>
    %11 = vector.shape_cast %10 : vector<1x49x16xf32> to vector<49x16xf32>
    %12 = vector.shape_cast %9 : vector<49x16xf32> to vector<1x49x16xf32>
    tpu.vector_store %arg4[%c0_9, %c1_10, %c0_11], %12 {strides = array<i32>} : memref<2x50x16xf32, #tpu.memory_space<vmem>>, vector<1x49x16xf32>,
    %c1_12 = arith.constant 1 : index
    %c0_13 = arith.constant 0 : index
    %c0_14 = arith.constant 0 : index
    %13 = vector.load %arg4[%c1_12, %c0_13, %c0_14] : memref<2x50x16xf32, #tpu.memory_space<vmem>>, vector<1x1x16xf32>
    %14 = vector.shape_cast %13 : vector<1x1x16xf32> to vector<1x16xf32>
    %15 = vector.shape_cast %3 : vector<1x16xf32> to vector<1x1x16xf32>
    tpu.vector_store %arg4[%c1_12, %c0_13, %c0_14], %15 {strides = array<i32>} : memref<2x50x16xf32, #tpu.memory_space<vmem>>, vector<1x1x16xf32>,
    %16 = vector.extract_strided_slice %2 {offsets = [49, 0], sizes = [49, 16], strides = [1, 1]} : vector<98x16xf32> to vector<49x16xf32>
    %17 = arith.addf %16, %4 : vector<49x16xf32>
    %c1_15 = arith.constant 1 : index
    %c1_16 = arith.constant 1 : index
    %c0_17 = arith.constant 0 : index
    %18 = vector.load %arg4[%c1_15, %c1_16, %c0_17] : memref<2x50x16xf32, #tpu.memory_space<vmem>>, vector<1x49x16xf32>
    %19 = vector.shape_cast %18 : vector<1x49x16xf32> to vector<49x16xf32>
    %20 = vector.shape_cast %17 : vector<49x16xf32> to vector<1x49x16xf32>
    tpu.vector_store %arg4[%c1_15, %c1_16, %c0_17], %20 {strides = array<i32>} : memref<2x50x16xf32, #tpu.memory_space<vmem>>, vector<1x49x16xf32>,
    return
  }
  func.func @transform_0(%arg0: i32) -> (i32, i32) {
    %c0_i32 = arith.constant 0 : i32
    %c0_i32_0 = arith.constant 0 : i32
    %c0_i32_1 = arith.constant 0 : i32
    return %c0_i32, %c0_i32_0 : i32, i32
  }
  func.func @transform_1(%arg0: i32) -> (i32, i32) {
    %c0_i32 = arith.constant 0 : i32
    %c0_i32_0 = arith.constant 0 : i32
    %c0_i32_1 = arith.constant 0 : i32
    return %c0_i32, %c0_i32_0 : i32, i32
  }
  func.func @transform_2(%arg0: i32) -> (i32, i32) {
    %c0_i32 = arith.constant 0 : i32
    %c0_i32_0 = arith.constant 0 : i32
    %c0_i32_1 = arith.constant 0 : i32
    return %c0_i32, %c0_i32_0 : i32, i32
  }
  func.func @transform_3(%arg0: i32) -> (i32, i32, i32) {
    %c0_i32 = arith.constant 0 : i32
    %c0_i32_0 = arith.constant 0 : i32
    %c0_i32_1 = arith.constant 0 : i32
    %c0_i32_2 = arith.constant 0 : i32
    return %c0_i32, %c0_i32_0, %c0_i32_1 : i32, i32, i32
  }
}

</mosaic_0001>

<bundles_post_ra>
// kernel: tpu_custom_call.1
= control target key start
LH: loop header
LB: loop body
LE: loop exit
PB: predicated region body
PF: predicated region fallthrough
CT: control target
= control target key end

     0   :  { %v360_v0 = vmov 0.0|0.0   ;;  %vm361_vm0 = vmmov 0   ;;  %v362_v4 = vmov 0.0   ;;  %vm29_vm1 = vcmask 130048   ;;  %s554_s1 = inlined_call_operand.vmem [shape: f32[16,16], index: 1, kind: input, shape index: {}]   ;;  %s555_s0 = inlined_call_operand.vmem [shape: f32[98,16], index: 0, kind: input, shape index: {}]   ;;  %s556_s2 = inlined_call_operand.vmem [shape: f32[50,16], index: 2, kind: input, shape index: {}]   ;;  %s557_s3 = inlined_call_operand.vmem [shape: f32[2,50,16], index: 3, kind: output, shape index: {}]  }
   0x1   :  { %352 = vmatprep.subr.bf16.mxu0 %v360_v0  ;;  %v27_v1 = vld [vmem:[%s554_s1] sm:$0xff]  ;;  %v28_v2 = vld [vmem:[%s554_s1 + $0x8] sm:$0xff]  ;;  %355 = vmatprep.subr.bf16.mxu1 %v360_v0  ;;  %v21_v6 = vld [vmem:[%s555_s0 + $0x38] sm:$0xff]  ;;  %vm207_vm2 = vcmask 122880   ;;  %vm232_vm3 = vcmask 1040384   ;;  %vm267_vm4 = vcmask 123904  }
   0x2   :  { %v353_v3 = vpack.c.bf16 %v28_v2, %v27_v1  ;;  %313 = vmatprep.mubr.msk.f32.mxu0 %vm361_vm0, %v362_v4  ;;  %334 = vmatprep.mubr.msk.f32.mxu1 %vm361_vm0, %v362_v4  ;;  %v14_v5 = vld [vmem:[%s555_s0] sm:$0xff]  ;;  %v15_v7 = vld [vmem:[%s555_s0 + $0x8] sm:$0xff]  ;;  %v16_v9 = vld [vmem:[%s555_s0 + $0x10] sm:$0xff]  ;;  %vm260_vm5 = vcmask 130049  }
   0x3   :  { %v22_v8 = vld [vmem:[%s555_s0 + $0x40] sm:$0xff]  ;;  %v23_v10 = vld [vmem:[%s555_s0 + $0x48] sm:$0xff]  ;;  %v17_v11 = vld [vmem:[%s555_s0 + $0x18] sm:$0xff] }
   0x4   :  { %354 = vmatpush3.bf16.msra.mxu0 %v353_v3  ;;  %356 = vmatpush3.bf16.msra.mxu1 %v353_v3  ;;  %v24_v12 = vld [vmem:[%s555_s0 + $0x50] sm:$0xff]  ;;  %v18_v13 = vld [vmem:[%s555_s0 + $0x20] sm:$0xff]  ;;  %v25_v14 = vld [vmem:[%s555_s0 + $0x58] sm:$0xff] }
   0x5   :  { %v19_v15 = vld [vmem:[%s555_s0 + $0x28] sm:$0xff]  ;;  %v26_v16 = vld [vmem:[%s555_s0 + $0x60] sm:$0x3]  ;;  %v20_v17 = vld [vmem:[%s555_s0 + $0x30] sm:$0xff] }
   0x6   :  { %v199_v18 = vld [vmem:[%s556_s2] sm:$0x1]  ;;  %v468_v19 = vld [vmem:[%s556_s2 + $0x1] sm:$0xff]  ;;  %v201_v20 = vld [vmem:[%s556_s2 + $0x9] sm:$0xff] }
   0x7   :  { %314 = vmatmul.mubr.msk.f32.vlgmr.msra.gmra.mrb[0].mxu0 %vm29_vm1, %v14_v5  ;;  %335 = vmatmul.mubr.msk.f32.vlgmr.msra.gmra.mrb[0].mxu1 %vm29_vm1, %v21_v6  ;;  %208 = vst.msk [vmem:[%s557_s3] sm:$0x1] %vm207_vm2, %v199_v18  ;;  %286 = vst.msk [vmem:[%s557_s3 + $0x38] sm:$0x1] %vm207_vm2, %v199_v18  ;;  %v233_v21 = vrot.slane %v468_v19, 7  ;;  %v234_v22 = vrot.slane %v201_v20, 7 }
   0x8   :  { %316 = vmatprep.mubr.msk.f32.mxu0 %vm361_vm0, %v362_v4  ;;  %337 = vmatprep.mubr.msk.f32.mxu1 %vm361_vm0, %v362_v4  ;;  %v202_v23 = vld [vmem:[%s556_s2 + $0x11] sm:$0xff]  ;;  %v203_v26 = vld [vmem:[%s556_s2 + $0x19] sm:$0xff]  ;;  %v204_v35 = vld [vmem:[%s556_s2 + $0x21] sm:$0xff] }
   0x9   :  { %v235_v24 = vsel %vm232_vm3, %v233_v21, %v234_v22  ;;  %v236_v25 = vrot.slane %v202_v23, 7  ;;  %v238_v34 = vrot.slane %v203_v26, 7  ;;  %v240_v43 = vrot.slane %v204_v35, 7  ;;  %v205_v44 = vld [vmem:[%s556_s2 + $0x29] sm:$0xff]  ;;  %v206_v53 = vld [vmem:[%s556_s2 + $0x31] sm:$0x1] }
   0xa   :  { %v242_v52 = vrot.slane %v205_v44, 7  ;;  %v244_v61 = vrot.slane %v206_v53, 7 }
   0xb   :  { %317 = vmatmul.mubr.msk.f32.gmra.mrb[2].mxu0 %vm29_vm1, %v15_v7  ;;  %338 = vmatmul.mubr.msk.f32.gmra.mrb[2].mxu1 %vm29_vm1, %v22_v8  ;;  %v237_v33 = vsel %vm232_vm3, %v234_v22, %v236_v25  ;;  %v239_v42 = vsel %vm232_vm3, %v236_v25, %v238_v34  ;;  %v241_v51 = vsel %vm232_vm3, %v238_v34, %v240_v43 }
   0xc   :  { %319 = vmatprep.mubr.msk.f32.mxu0 %vm361_vm0, %v362_v4  ;;  %340 = vmatprep.mubr.msk.f32.mxu1 %vm361_vm0, %v362_v4  ;;  %v243_v60 = vsel %vm232_vm3, %v240_v43, %v242_v52 }
   0xf   :  { %320 = vmatmul.mubr.msk.f32.gmra.mrb[4].mxu0 %vm29_vm1, %v16_v9  ;;  %341 = vmatmul.mubr.msk.f32.gmra.mrb[4].mxu1 %vm29_vm1, %v23_v10 }
  0x10   :  { %322 = vmatprep.mubr.msk.f32.mxu0 %vm361_vm0, %v362_v4  ;;  %343 = vmatprep.mubr.msk.f32.mxu1 %vm361_vm0, %v362_v4 }
  0x13   :  { %323 = vmatmul.mubr.msk.f32.gmra.mrb[6].mxu0 %vm29_vm1, %v17_v11  ;;  %344 = vmatmul.mubr.msk.f32.gmra.mrb[6].mxu1 %vm29_vm1, %v24_v12 }
  0x14   :  { %325 = vmatprep.mubr.msk.f32.mxu0 %vm361_vm0, %v362_v4  ;;  %346 = vmatprep.mubr.msk.f32.mxu1 %vm361_vm0, %v362_v4 }
  0x17   :  { %326 = vmatmul.mubr.msk.f32.gmra.mrb[8].mxu0 %vm29_vm1, %v18_v13  ;;  %347 = vmatmul.mubr.msk.f32.gmra.mrb[8].mxu1 %vm29_vm1, %v25_v14 }
  0x18   :  { %328 = vmatprep.mubr.msk.f32.mxu0 %vm361_vm0, %v362_v4  ;;  %349 = vmatprep.mubr.msk.f32.mxu1 %vm361_vm0, %v362_v4 }
  0x1b   :  { %329 = vmatmul.mubr.msk.f32.gmra.mrb[10].mxu0 %vm29_vm1, %v19_v15  ;;  %350 = vmatmul.mubr.msk.f32.gmra.mrb[10].mxu1 %vm29_vm1, %v26_v16 }
  0x1c   :  { %331 = vmatprep.mubr.msk.f32.mxu0 %vm361_vm0, %v362_v4  ;;  %v245_v4 = vsel %vm232_vm3, %v242_v52, %v244_v61 }
  0x1f   :  { %332 = vmatmul.mubr.msk.f32.gmra.mrb[12].mxu0 %vm29_vm1, %v20_v17 }
  0xda   :  { %v135_v27 = vpop.f32.mrb[0].mxu0  ;;  %v170_v28 = vpop.f32.mrb[0].mxu1 }
  0xdb   :  { %v209_v29 = vadd.f32 %v468_v19, %v135_v27  ;;  %v315_v30 = vpop.f32.mrb[1].mxu0  ;;  %v254_v31 = vadd.f32 %v235_v24, %v170_v28  ;;  %v336_v32 = vpop.f32.mrb[1].mxu1 }
  0xdd   :  { %216 = vst.msk [vmem:[%s557_s3 + $0x1] sm:$0xff] %vm29_vm1, %v209_v29  ;;  %288 = vst.msk [vmem:[%s557_s3 + $0x40] sm:$0xff] %vm29_vm1, %v254_v31 }
  0xde   :  { %v140_v36 = vpop.f32.mrb[2].mxu0  ;;  %v175_v37 = vpop.f32.mrb[2].mxu1 }
  0xdf   :  { %v210_v38 = vadd.f32 %v201_v20, %v140_v36  ;;  %v318_v39 = vpop.f32.mrb[3].mxu0  ;;  %v255_v40 = vadd.f32 %v237_v33, %v175_v37  ;;  %v339_v41 = vpop.f32.mrb[3].mxu1 }
  0xe1   :  { %217 = vst.msk [vmem:[%s557_s3 + $0x9] sm:$0xff] %vm29_vm1, %v210_v38  ;;  %289 = vst.msk [vmem:[%s557_s3 + $0x48] sm:$0xff] %vm29_vm1, %v255_v40 }
  0xe2   :  { %v145_v45 = vpop.f32.mrb[4].mxu0  ;;  %v180_v46 = vpop.f32.mrb[4].mxu1 }
  0xe3   :  { %v211_v47 = vadd.f32 %v202_v23, %v145_v45  ;;  %v321_v48 = vpop.f32.mrb[5].mxu0  ;;  %v256_v49 = vadd.f32 %v239_v42, %v180_v46  ;;  %v342_v50 = vpop.f32.mrb[5].mxu1 }
  0xe5   :  { %218 = vst.msk [vmem:[%s557_s3 + $0x11] sm:$0xff] %vm29_vm1, %v211_v47  ;;  %290 = vst.msk [vmem:[%s557_s3 + $0x50] sm:$0xff] %vm29_vm1, %v256_v49 }
  0xe6   :  { %v150_v54 = vpop.f32.mrb[6].mxu0  ;;  %v185_v55 = vpop.f32.mrb[6].mxu1 }
  0xe7   :  { %v212_v56 = vadd.f32 %v203_v26, %v150_v54  ;;  %v324_v57 = vpop.f32.mrb[7].mxu0  ;;  %v257_v58 = vadd.f32 %v241_v51, %v185_v55  ;;  %v345_v59 = vpop.f32.mrb[7].mxu1 }
  0xe9   :  { %219 = vst.msk [vmem:[%s557_s3 + $0x19] sm:$0xff] %vm29_vm1, %v212_v56  ;;  %291 = vst.msk [vmem:[%s557_s3 + $0x58] sm:$0xff] %vm29_vm1, %v257_v58 }
  0xea   :  { %v155_v62 = vpop.f32.mrb[8].mxu0  ;;  %v190_v63 = vpop.f32.mrb[8].mxu1 }
  0xeb   :  { %v213_v0 = vadd.f32 %v204_v35, %v155_v62  ;;  %v327_v1 = vpop.f32.mrb[9].mxu0  ;;  %v258_v2 = vadd.f32 %v243_v60, %v190_v63  ;;  %v348_v3 = vpop.f32.mrb[9].mxu1 }
  0xed   :  { %220 = vst.msk [vmem:[%s557_s3 + $0x21] sm:$0xff] %vm29_vm1, %v213_v0  ;;  %292 = vst.msk [vmem:[%s557_s3 + $0x60] sm:$0xff] %vm29_vm1, %v258_v2 }
  0xee   :  { %v160_v5 = vpop.f32.mrb[10].mxu0  ;;  %v195_v6 = vpop.f32.mrb[10].mxu1 }
  0xef   :  { %v214_v7 = vadd.f32 %v205_v44, %v160_v5  ;;  %v330_v8 = vpop.f32.mrb[11].mxu0  ;;  %v259_v9 = vadd.f32 %v245_v4, %v195_v6  ;;  %v351_v10 = vpop.f32.mrb[11].mxu1 }
  0xf1   :  { %221 = vst.msk [vmem:[%s557_s3 + $0x29] sm:$0xff] %vm29_vm1, %v214_v7 }
  0xf2   :  { %293 = vst.msk [vmem:[%s557_s3 + $0x68] sm:$0x3] %vm267_vm4, %v259_v9  ;;  %v165_v11 = vpop.f32.mrb[12].mxu0 }
  0xf3   :  { %v215_v12 = vadd.f32 %v206_v53, %v165_v11  ;;  %v253_v13 = vadd.f32 %v233_v21, %v165_v11  ;;  %v333_v14 = vpop.f32.mrb[13].mxu0 }
  0xf5   :  { %222 = vst.msk [vmem:[%s557_s3 + $0x31] sm:$0x1] %vm207_vm2, %v215_v12 }
  0xf6   :  { %287 = vst.msk [vmem:[%s557_s3 + $0x38] sm:$0xfe] %vm260_vm5, %v253_v13 }

</bundles_post_ra>
